<compile_context>
chip_gen: v5e
topology: v5e:2x2
jax: 0.10.0
libtpu: 0.0.40
codegen_flags: <defaults>
</compile_context>

<pallas_src>
import jax
import jax.numpy as jnp
import numpy as np
from jax import lax
from jax.experimental import pallas as pl
from jax.experimental.pallas import tpu as pltpu


def _cdiv(a, b):
    return (a + b - 1) // b


def _round_up(x, m):
    return ((x + m - 1) // m) * m


def _chip_profile():
    """(tensorcores per chip, max batch tile) for the current TPU generation."""
    kind = ""
    try:
        kind = jax.devices()[0].device_kind.lower()
    except Exception:
        pass
    n_tc = 2 if "7" in kind else 1                    # v7x: 2 TensorCores/chip
    # v5e: cap the tile so spilled f32 activations don't make the single
    # vector-store slot the binding unit; elsewhere bigger tiles just amortize
    # per-grid-step overhead (total VMEM footprint stays < a few MiB).
    max_tile = 1024 if ("v5e" in kind or "v5 lite" in kind) else 4096
    return n_tc, max_tile


def _pick_tiling(batch, n_tc, max_tile):
    """Batch tile / grid-step count: multiples of 128 lanes, even TC split."""
    b128 = _round_up(max(batch, 1), 128)
    tile_b = min(_round_up(_cdiv(b128, n_tc), 128), max_tile)
    num_tiles = _cdiv(b128, tile_b)
    if n_tc > 1 and num_tiles % n_tc:
        num_tiles = _round_up(num_tiles, n_tc)        # even split across TCs
    return tile_b, num_tiles, num_tiles * tile_b


def warnet_kernel(x_ref, w1_ref, b1_ref, w2_ref, b2_ref, w3_ref, b3_ref,
                  wo_ref, bo_ref, o_ref):
    bf16 = jnp.bfloat16
    f32 = jnp.float32
    # x tile arrives f32 batch-major (tile_b, n_in); cast in-kernel (halves x
    # HBM traffic vs. a wrapper-side cast copy and drops an extra XLA launch).
    x = x_ref[...].astype(bf16)
    # layer 1: contract the shared feature axis of w1 (n_h1, n_in) and
    # x (tile_b, n_in) -> h^T (n_h1, tile_b).   (q @ k^T - style matmul)
    h = lax.dot_general(w1_ref[...], x,
                        dimension_numbers=(((1,), (1,)), ((), ())),
                        preferred_element_type=f32)
    h = jnp.maximum(h + b1_ref[...], 0.0)             # lane-dense bias + ReLU
    # layers 2, 3: standard (out, in) @ (in, tile_b) matmuls, feature-major.
    h = jnp.dot(w2_ref[...], h.astype(bf16), preferred_element_type=f32)
    h = jnp.maximum(h + b2_ref[...], 0.0)
    h = jnp.dot(w3_ref[...], h.astype(bf16), preferred_element_type=f32)
    h = jnp.maximum(h + b3_ref[...], 0.0)
    # out layer: (1, n_h3) @ (n_h3, tile_b) -> (1, tile_b) lane-dense row.
    y = jnp.dot(wo_ref[...], h.astype(bf16), preferred_element_type=f32)
    o_ref[...] = (y + bo_ref[...]).astype(o_ref.dtype)


def warnet_forward(x, params):
    """Fused WARNet forward pass on TPU via Pallas.

    params: ((w1, b1), (w2, b2), (w3, b3), (wo, bo)) in nn.Linear's native
    layout: wK of shape (out_features, in_features), bK of shape (out_features,),
    all float32.  x: (B, n_input) float32.  Returns (B, 1) float32.
    """
    (w1, b1), (w2, b2), (w3, b3), (wo, bo) = params
    B, n_in = x.shape
    n_h1, n_h2, n_h3 = w1.shape[0], w2.shape[0], w3.shape[0]

    n_tc, max_tile = _chip_profile()
    tile_b, num_tiles, b_pad = _pick_tiling(B, n_tc, max_tile)

    # Pad only when needed (padded rows produce relu(bias) garbage that is
    # sliced off below; never reduce over the padded output row before slicing).
    x_p = x if b_pad == B else jnp.pad(x, ((0, b_pad - B), (0, 0)))

    # bf16 weights (one-time ~10 KiB DMA), f32 biases as (out, 1) columns.
    w1b, w2b, w3b, wob = (w.astype(jnp.bfloat16) for w in (w1, w2, w3, wo))
    b1c, b2c, b3c, boc = (b.reshape(-1, 1).astype(jnp.float32)
                          for b in (b1, b2, b3, bo))

    def resident(arr):
        # whole array, same block every grid step -> DMA'd once, stays in VMEM
        return pl.BlockSpec(arr.shape, lambda i: (0, 0))

    flops = 2 * b_pad * (n_in * n_h1 + n_h1 * n_h2 + n_h2 * n_h3 + n_h3)
    bytes_accessed = (x_p.size * 4 + b_pad * 4
                      + 2 * (w1b.size + w2b.size + w3b.size + wob.size)
                      + 4 * (b1c.size + b2c.size + b3c.size + boc.size))

    out_row = pl.pallas_call(
        warnet_kernel,
        out_shape=jax.ShapeDtypeStruct((1, b_pad), jnp.float32),
        grid_spec=pl.GridSpec(
            grid=(num_tiles,),
            in_specs=[
                pl.BlockSpec((tile_b, n_in), lambda i: (i, 0)),   # x batch tile
                resident(w1b), resident(b1c),
                resident(w2b), resident(b2c),
                resident(w3b), resident(b3c),
                resident(wob), resident(boc),
            ],
            # lane-dense output: each grid step writes a tile_b-lane chunk of
            # the single output row.
            out_specs=pl.BlockSpec((1, tile_b), lambda i: (0, i)),
        ),
        compiler_params=pltpu.CompilerParams(
            dimension_semantics=("parallel",)),
        cost_estimate=pl.CostEstimate(flops=flops, transcendentals=0,
                                      bytes_accessed=bytes_accessed),
    )(x_p, w1b, b1c, w2b, b2c, w3b, b3c, wob, boc)

    # (1, B_pad) row -> (B, 1) column, dropping batch padding.
    return out_row.reshape(b_pad, 1)[:B]


def init_linear(key, fan_in, fan_out):
    """Deterministic init mimicking nn.Linear defaults (uniform +/- 1/sqrt(fan_in)).
    Weight returned in nn.Linear's native (out_features, in_features) layout."""
    kw, kb = jax.random.split(key)
    bound = 1.0 / np.sqrt(fan_in)
    w = jax.random.uniform(kw, (fan_out, fan_in), jnp.float32, -bound, bound)
    b = jax.random.uniform(kb, (fan_out,), jnp.float32, -bound, bound)
    return w, b


def reference_forward(x, params):
    """Pure-JAX reference (batch-major) with the same bf16-weight / f32-accum recipe."""
    (w1, b1), (w2, b2), (w3, b3), (wo, bo) = params
    bf16, f32 = jnp.bfloat16, jnp.float32
    h = x
    for w, b in ((w1, b1), (w2, b2), (w3, b3)):
        h = jnp.dot(h.astype(bf16), w.T.astype(bf16),
                    preferred_element_type=f32) + b
        h = jnp.maximum(h, 0.0)
    return jnp.dot(h.astype(bf16), wo.T.astype(bf16),
                   preferred_element_type=f32) + bo


if __name__ == "__main__":
    # WARNet(n_input=32, n_hidden1=64, n_hidden2=32, n_hidden3=16), batch=512
    n_input, n_h1, n_h2, n_h3 = 32, 64, 32, 16
    batch = 512

    key = jax.random.PRNGKey(0)
    kx, k1, k2, k3, k4 = jax.random.split(key, 5)

    x = jax.random.normal(kx, (batch, n_input), jnp.float32)
    params = (
        init_linear(k1, n_input, n_h1),
        init_linear(k2, n_h1, n_h2),
        init_linear(k3, n_h2, n_h3),
        init_linear(k4, n_h3, 1),
    )

    y = jax.block_until_ready(warnet_forward(x, params))

    y_ref = jax.block_until_ready(reference_forward(x, params))
    np.testing.assert_allclose(np.asarray(y), np.asarray(y_ref),
                               rtol=1e-3, atol=1e-3)

    print("KERNEL_OK")
</pallas_src>

<mosaic_0001>
module attributes {stable_mosaic.version = 11 : i64} {
  func.func @warnet_kernel(%arg0: i32, %arg1: memref<512x32xf32, #tpu.memory_space<vmem>>, %arg2: memref<64x32xbf16, #tpu.memory_space<vmem>>, %arg3: memref<64x1xf32, #tpu.memory_space<vmem>>, %arg4: memref<32x64xbf16, #tpu.memory_space<vmem>>, %arg5: memref<32x1xf32, #tpu.memory_space<vmem>>, %arg6: memref<16x32xbf16, #tpu.memory_space<vmem>>, %arg7: memref<16x1xf32, #tpu.memory_space<vmem>>, %arg8: memref<1x16xbf16, #tpu.memory_space<vmem>>, %arg9: memref<1x1xf32, #tpu.memory_space<vmem>>, %arg10: memref<1x512xf32, #tpu.memory_space<vmem>>) attributes {dimension_semantics = [#tpu.dimension_semantics<parallel>], iteration_bounds = array<i64: 1>, scalar_prefetch = 0 : i64, scratch_operands = 0 : i64, tpu.core_type = #tpu.core_type<tc>, window_params = [{transform_indices = @transform_0, window_bounds = array<i64: 512, 32>}, {pipeline_mode = #tpu.pipeline_mode<synchronous>, transform_indices = @transform_1, window_bounds = array<i64: 64, 32>}, {pipeline_mode = #tpu.pipeline_mode<synchronous>, transform_indices = @transform_2, window_bounds = array<i64: 64, 1>}, {pipeline_mode = #tpu.pipeline_mode<synchronous>, transform_indices = @transform_3, window_bounds = array<i64: 32, 64>}, {pipeline_mode = #tpu.pipeline_mode<synchronous>, transform_indices = @transform_4, window_bounds = array<i64: 32, 1>}, {pipeline_mode = #tpu.pipeline_mode<synchronous>, transform_indices = @transform_5, window_bounds = array<i64: 16, 32>}, {pipeline_mode = #tpu.pipeline_mode<synchronous>, transform_indices = @transform_6, window_bounds = array<i64: 16, 1>}, {pipeline_mode = #tpu.pipeline_mode<synchronous>, transform_indices = @transform_7, window_bounds = array<i64: 1, 16>}, {pipeline_mode = #tpu.pipeline_mode<synchronous>, transform_indices = @transform_8, window_bounds = array<i64: 1, 1>}, {transform_indices = @transform_9, window_bounds = array<i64: 1, 512>}]} {
    %c0 = arith.constant 0 : index
    %c0_0 = arith.constant 0 : index
    %0 = vector.load %arg1[%c0, %c0_0] : memref<512x32xf32, #tpu.memory_space<vmem>>, vector<512x32xf32>
    %1 = arith.truncf %0 : vector<512x32xf32> to vector<512x32xbf16>
    %c0_1 = arith.constant 0 : index
    %c0_2 = arith.constant 0 : index
    %2 = vector.load %arg2[%c0_1, %c0_2] : memref<64x32xbf16, #tpu.memory_space<vmem>>, vector<64x32xbf16>
    %cst = arith.constant dense<0.000000e+00> : vector<64x512xf32>
    %3 = tpu.matmul %2, %1, %cst {dimension_numbers = #tpu.dot_dimension_numbers<[1], [1], [0], [0], [0, 0, 1, 0], [], []>} : vector<64x32xbf16>, vector<512x32xbf16>, vector<64x512xf32> -> vector<64x512xf32>
    %c0_3 = arith.constant 0 : index
    %c0_4 = arith.constant 0 : index
    %4 = vector.load %arg3[%c0_3, %c0_4] : memref<64x1xf32, #tpu.memory_space<vmem>>, vector<64x1xf32>
    %5 = vector.broadcast %4 : vector<64x1xf32> to vector<64x512xf32>
    %6 = arith.addf %3, %5 : vector<64x512xf32>
    %cst_5 = arith.constant 0.000000e+00 : f32
    %7 = vector.broadcast %cst_5 : f32 to vector<64x512xf32>
    %8 = arith.maximumf %6, %7 : vector<64x512xf32>
    %c0_6 = arith.constant 0 : index
    %c0_7 = arith.constant 0 : index
    %9 = vector.load %arg4[%c0_6, %c0_7] : memref<32x64xbf16, #tpu.memory_space<vmem>>, vector<32x64xbf16>
    %10 = arith.truncf %8 : vector<64x512xf32> to vector<64x512xbf16>
    %cst_8 = arith.constant dense<0.000000e+00> : vector<32x512xf32>
    %11 = tpu.matmul %9, %10, %cst_8 {dimension_numbers = #tpu.dot_dimension_numbers<[1], [0], [0], [1], [0, 0, 1, 1], [], []>} : vector<32x64xbf16>, vector<64x512xbf16>, vector<32x512xf32> -> vector<32x512xf32>
    %c0_9 = arith.constant 0 : index
    %c0_10 = arith.constant 0 : index
    %12 = vector.load %arg5[%c0_9, %c0_10] : memref<32x1xf32, #tpu.memory_space<vmem>>, vector<32x1xf32>
    %13 = vector.broadcast %12 : vector<32x1xf32> to vector<32x512xf32>
    %14 = arith.addf %11, %13 : vector<32x512xf32>
    %cst_11 = arith.constant 0.000000e+00 : f32
    %15 = vector.broadcast %cst_11 : f32 to vector<32x512xf32>
    %16 = arith.maximumf %14, %15 : vector<32x512xf32>
    %c0_12 = arith.constant 0 : index
    %c0_13 = arith.constant 0 : index
    %17 = vector.load %arg6[%c0_12, %c0_13] : memref<16x32xbf16, #tpu.memory_space<vmem>>, vector<16x32xbf16>
    %18 = arith.truncf %16 : vector<32x512xf32> to vector<32x512xbf16>
    %cst_14 = arith.constant dense<0.000000e+00> : vector<16x512xf32>
    %19 = tpu.matmul %17, %18, %cst_14 {dimension_numbers = #tpu.dot_dimension_numbers<[1], [0], [0], [1], [0, 0, 1, 1], [], []>} : vector<16x32xbf16>, vector<32x512xbf16>, vector<16x512xf32> -> vector<16x512xf32>
    %c0_15 = arith.constant 0 : index
    %c0_16 = arith.constant 0 : index
    %20 = vector.load %arg7[%c0_15, %c0_16] : memref<16x1xf32, #tpu.memory_space<vmem>>, vector<16x1xf32>
    %21 = vector.broadcast %20 : vector<16x1xf32> to vector<16x512xf32>
    %22 = arith.addf %19, %21 : vector<16x512xf32>
    %cst_17 = arith.constant 0.000000e+00 : f32
    %23 = vector.broadcast %cst_17 : f32 to vector<16x512xf32>
    %24 = arith.maximumf %22, %23 : vector<16x512xf32>
    %c0_18 = arith.constant 0 : index
    %c0_19 = arith.constant 0 : index
    %25 = vector.load %arg8[%c0_18, %c0_19] : memref<1x16xbf16, #tpu.memory_space<vmem>>, vector<1x16xbf16>
    %26 = arith.truncf %24 : vector<16x512xf32> to vector<16x512xbf16>
    %cst_20 = arith.constant dense<0.000000e+00> : vector<1x512xf32>
    %27 = tpu.matmul %25, %26, %cst_20 {dimension_numbers = #tpu.dot_dimension_numbers<[1], [0], [0], [1], [0, 0, 1, 1], [], []>} : vector<1x16xbf16>, vector<16x512xbf16>, vector<1x512xf32> -> vector<1x512xf32>
    %c0_21 = arith.constant 0 : index
    %c0_22 = arith.constant 0 : index
    %28 = vector.load %arg9[%c0_21, %c0_22] : memref<1x1xf32, #tpu.memory_space<vmem>>, vector<1x1xf32>
    %29 = vector.broadcast %28 : vector<1x1xf32> to vector<1x512xf32>
    %30 = arith.addf %27, %29 : vector<1x512xf32>
    %c0_23 = arith.constant 0 : index
    %c0_24 = arith.constant 0 : index
    %31 = vector.load %arg10[%c0_23, %c0_24] : memref<1x512xf32, #tpu.memory_space<vmem>>, vector<1x512xf32>
    tpu.vector_store %arg10[%c0_23, %c0_24], %30 {strides = array<i32>} : memref<1x512xf32, #tpu.memory_space<vmem>>, vector<1x512xf32>,
    return
  }
  func.func @transform_0(%arg0: i32) -> (i32, i32) {
    %c0_i32 = arith.constant 0 : i32
    %c0_i32_0 = arith.constant 0 : i32
    return %arg0, %c0_i32 : i32, i32
  }
  func.func @transform_1(%arg0: i32) -> (i32, i32) {
    %c0_i32 = arith.constant 0 : i32
    %c0_i32_0 = arith.constant 0 : i32
    %c0_i32_1 = arith.constant 0 : i32
    return %c0_i32, %c0_i32_0 : i32, i32
  }
  func.func @transform_2(%arg0: i32) -> (i32, i32) {
    %c0_i32 = arith.constant 0 : i32
    %c0_i32_0 = arith.constant 0 : i32
    %c0_i32_1 = arith.constant 0 : i32
    return %c0_i32, %c0_i32_0 : i32, i32
  }
  func.func @transform_3(%arg0: i32) -> (i32, i32) {
    %c0_i32 = arith.constant 0 : i32
    %c0_i32_0 = arith.constant 0 : i32
    %c0_i32_1 = arith.constant 0 : i32
    return %c0_i32, %c0_i32_0 : i32, i32
  }
  func.func @transform_4(%arg0: i32) -> (i32, i32) {
    %c0_i32 = arith.constant 0 : i32
    %c0_i32_0 = arith.constant 0 : i32
    %c0_i32_1 = arith.constant 0 : i32
    return %c0_i32, %c0_i32_0 : i32, i32
  }
  func.func @transform_5(%arg0: i32) -> (i32, i32) {
    %c0_i32 = arith.constant 0 : i32
    %c0_i32_0 = arith.constant 0 : i32
    %c0_i32_1 = arith.constant 0 : i32
    return %c0_i32, %c0_i32_0 : i32, i32
  }
  func.func @transform_6(%arg0: i32) -> (i32, i32) {
    %c0_i32 = arith.constant 0 : i32
    %c0_i32_0 = arith.constant 0 : i32
    %c0_i32_1 = arith.constant 0 : i32
    return %c0_i32, %c0_i32_0 : i32, i32
  }
  func.func @transform_7(%arg0: i32) -> (i32, i32) {
    %c0_i32 = arith.constant 0 : i32
    %c0_i32_0 = arith.constant 0 : i32
    %c0_i32_1 = arith.constant 0 : i32
    return %c0_i32, %c0_i32_0 : i32, i32
  }
  func.func @transform_8(%arg0: i32) -> (i32, i32) {
    %c0_i32 = arith.constant 0 : i32
    %c0_i32_0 = arith.constant 0 : i32
    %c0_i32_1 = arith.constant 0 : i32
    return %c0_i32, %c0_i32_0 : i32, i32
  }
  func.func @transform_9(%arg0: i32) -> (i32, i32) {
    %c0_i32 = arith.constant 0 : i32
    %c0_i32_0 = arith.constant 0 : i32
    return %c0_i32, %arg0 : i32, i32
  }
}

</mosaic_0001>

<bundles_post_ra>
// kernel: tpu_custom_call.1
= control target key start
LH: loop header
LB: loop body
LE: loop exit
PB: predicated region body
PF: predicated region fallthrough
CT: control target
= control target key end

     0   :  { %s1346_s0 = inlined_call_operand.vmem [shape: f32[512,32], index: 0, kind: input, shape index: {}]   ;;  %s1347_s1 = inlined_call_operand.vmem [shape: bf16[64,32], index: 1, kind: input, shape index: {}]   ;;  %s1348_s2 = inlined_call_operand.vmem [shape: f32[64,1], index: 2, kind: input, shape index: {}]   ;;  %s1349_s3 = inlined_call_operand.vmem [shape: bf16[32,64], index: 3, kind: input, shape index: {}]   ;;  %s1350_s4 = inlined_call_operand.vmem [shape: f32[32,1], index: 4, kind: input, shape index: {}]   ;;  %s1351_s5 = inlined_call_operand.vmem [shape: bf16[16,32], index: 5, kind: input, shape index: {}]   ;;  %s1352_s6 = inlined_call_operand.vmem [shape: f32[16,1], index: 6, kind: input, shape index: {}]   ;;  %s1353_s7 = inlined_call_operand.vmem [shape: bf16[1,16], index: 7, kind: input, shape index: {}]   ;;  %s1354_s8 = inlined_call_operand.<no memory space> [shape: f32[1,1], index: 8, kind: input, shape index: {}]   ;;  %s1355_s9 = inlined_call_operand.hbm [shape: f32[1,512], index: 9, kind: output, shape index: {}]  }
   0x1   :  { %v14_v0 = vstv %s1354_s8 }
   0x2   :  { %15 = vst [vmem:[#allocation2] sm:$0x1] %v14_v0 }
   0x3   :  { %v50_v1 = vld [vmem:[%s1346_s0 + $0x70] sm:$0xff]  ;;  %v51_v2 = vld [vmem:[%s1346_s0 + $0x78] sm:$0xff]  ;;  %vm208_vm0 = vcmask 261120   ;;  %v48_v12 = vld [vmem:[%s1346_s0 + $0x60] sm:$0xff] }
   0x4   :  { %v66_v3 = vld [vmem:[%s1346_s0 + $0xf0] sm:$0xff]  ;;  %v107_v4 = vpack.c.bf16 %v51_v2, %v50_v1  ;;  %v67_v5 = vld [vmem:[%s1346_s0 + $0xf8] sm:$0xff]  ;;  %v49_v15 = vld [vmem:[%s1346_s0 + $0x68] sm:$0xff] }
   0x5   :  { %v82_v6 = vld [vmem:[%s1346_s0 + $0x170] sm:$0xff]  ;;  %v83_v7 = vld [vmem:[%s1346_s0 + $0x178] sm:$0xff]  ;;  %v115_v8 = vpack.c.bf16 %v67_v5, %v66_v3  ;;  %v64_v16 = vld [vmem:[%s1346_s0 + $0xe0] sm:$0xff]  ;;  %v106_v24 = vpack.c.bf16 %v49_v15, %v48_v12 }
   0x6   :  { %v123_v9 = vpack.c.bf16 %v83_v7, %v82_v6  ;;  %v98_v10 = vld [vmem:[%s1346_s0 + $0x1f0] sm:$0xff]  ;;  %v99_v11 = vld [vmem:[%s1346_s0 + $0x1f8] sm:$0xff]  ;;  %v243_v13 = vsel %vm208_vm0, %v107_v4, 0  ;;  %v65_v17 = vld [vmem:[%s1346_s0 + $0xe8] sm:$0xff] }
   0x7   :  { %v131_v14 = vpack.c.bf16 %v99_v11, %v98_v10  ;;  %317 = vmatpush.bf16.xpose.msra.mxu0 %v243_v13  ;;  %v267_v18 = vsel %vm208_vm0, %v115_v8, 0  ;;  %v80_v20 = vld [vmem:[%s1346_s0 + $0x160] sm:$0xff]  ;;  %v81_v21 = vld [vmem:[%s1346_s0 + $0x168] sm:$0xff]  ;;  %v114_v26 = vpack.c.bf16 %v65_v17, %v64_v16  ;;  %v240_v29 = vsel %vm208_vm0, %v106_v24, 0  ;;  %v46_v32 = vld [vmem:[%s1346_s0 + $0x50] sm:$0xff] }
   0x8   :  { %v291_v19 = vsel %vm208_vm0, %v123_v9, 0  ;;  %v96_v22 = vld [vmem:[%s1346_s0 + $0x1e0] sm:$0xff]  ;;  %346 = vmatpush.bf16.xpose.msra.mxu1 %v267_v18  ;;  %v97_v25 = vld [vmem:[%s1346_s0 + $0x1e8] sm:$0xff]  ;;  %v122_v27 = vpack.c.bf16 %v81_v21, %v80_v20  ;;  %v47_v33 = vld [vmem:[%s1346_s0 + $0x58] sm:$0xff] }
   0x9   :  { %375 = vmatpush.bf16.xpose.msra.mxu2 %v291_v19  ;;  %v315_v23 = vsel %vm208_vm0, %v131_v14, 0  ;;  %v130_v28 = vpack.c.bf16 %v97_v25, %v96_v22  ;;  %v264_v30 = vsel %vm208_vm0, %v114_v26, 0  ;;  %v62_v34 = vld [vmem:[%s1346_s0 + $0xd0] sm:$0xff]  ;;  %v63_v36 = vld [vmem:[%s1346_s0 + $0xd8] sm:$0xff]  ;;  %v105_v41 = vpack.c.bf16 %v47_v33, %v46_v32 }
   0xa   :  { %404 = vmatpush.bf16.xpose.msra.mxu3 %v315_v23  ;;  %v288_v31 = vsel %vm208_vm0, %v122_v27, 0  ;;  %v78_v37 = vld [vmem:[%s1346_s0 + $0x150] sm:$0xff]  ;;  %v79_v38 = vld [vmem:[%s1346_s0 + $0x158] sm:$0xff]  ;;  %v113_v42 = vpack.c.bf16 %v63_v36, %v62_v34 }
   0xb   :  { %v312_v35 = vsel %vm208_vm0, %v130_v28, 0  ;;  %v94_v39 = vld [vmem:[%s1346_s0 + $0x1d0] sm:$0xff]  ;;  %v95_v40 = vld [vmem:[%s1346_s0 + $0x1d8] sm:$0xff]  ;;  %v121_v43 = vpack.c.bf16 %v79_v38, %v78_v37 }
   0xc   :  { %v129_v44 = vpack.c.bf16 %v95_v40, %v94_v39 }
   0xf   :  { %318 = vmatpush.bf16.xpose.msra.mxu0 %v240_v29 }
  0x10   :  { %347 = vmatpush.bf16.xpose.msra.mxu1 %v264_v30 }
  0x11   :  { %376 = vmatpush.bf16.xpose.msra.mxu2 %v288_v31 }
  0x12   :  { %405 = vmatpush.bf16.xpose.msra.mxu3 %v312_v35 }
  0x13   :  { %16 = vsyncpa [#allocation4], 0  ;;  %v237_v45 = vsel %vm208_vm0, %v105_v41, 0  ;;  %v261_v46 = vsel %vm208_vm0, %v113_v42, 0  ;;  %v285_v47 = vsel %vm208_vm0, %v121_v43, 0  ;;  %v44_v48 = vld [vmem:[%s1346_s0 + $0x40] sm:$0xff] }
  0x14   :  { %v45_v49 = vld [vmem:[%s1346_s0 + $0x48] sm:$0xff]  ;;  %v60_v50 = vld [vmem:[%s1346_s0 + $0xc0] sm:$0xff]  ;;  %v309_v51 = vsel %vm208_vm0, %v129_v44, 0  ;;  %v42_v0 = vld [vmem:[%s1346_s0 + $0x30] sm:$0xff]  ;;  %v913_v13 = vmov 0   ;;  %vm519_vm1 = vcmask 523264  }
  0x15   :  { %v61_v52 = vld [vmem:[%s1346_s0 + $0xc8] sm:$0xff]  ;;  %v76_v53 = vld [vmem:[%s1346_s0 + $0x140] sm:$0xff]  ;;  %v104_v57 = vpack.c.bf16 %v45_v49, %v44_v48  ;;  %v43_v1 = vld [vmem:[%s1346_s0 + $0x38] sm:$0xff]  ;;  %884 = vset.pattern.permute.xlu0 %v913_v13  ;;  %885 = vset.pattern.permute.xlu1 %v913_v13  ;;  %vm724_vm2 = vcmask 130048   ;;  %vm787_vm3 = vcmask 1040384   ;;  %vm789_vm4 = vcmask 1042434  }
  0x16   :  { %v77_v54 = vld [vmem:[%s1346_s0 + $0x148] sm:$0xff]  ;;  %v92_v55 = vld [vmem:[%s1346_s0 + $0x1c0] sm:$0xff]  ;;  %v112_v58 = vpack.c.bf16 %v61_v52, %v60_v50  ;;  %v58_v2 = vld [vmem:[%s1346_s0 + $0xb0] sm:$0xff]  ;;  %v103_v9 = vpack.c.bf16 %v43_v1, %v42_v0  ;;  %886 = vset.pattern.permute.xlu2 %v913_v13  ;;  %s806_s23 = sshll.u32 %s1355_s9, 4  ;;  %vm791_vm5 = vcmask 1041408   ;;  %s807_s23 = int_to_ptr.hbm [resolvable:$true] %s806_s23 }
  0x17   :  { %319 = vmatpush.bf16.xpose.msra.mxu0 %v237_v45  ;;  %v93_v56 = vld [vmem:[%s1346_s0 + $0x1c8] sm:$0xff]  ;;  %v120_v59 = vpack.c.bf16 %v77_v54, %v76_v53  ;;  %v234_v61 = vsel %vm208_vm0, %v104_v57, 0  ;;  %v59_v4 = vld [vmem:[%s1346_s0 + $0xb8] sm:$0xff]  ;;  %v74_v5 = vld [vmem:[%s1346_s0 + $0x130] sm:$0xff] }
  0x18   :  { %348 = vmatpush.bf16.xpose.msra.mxu1 %v261_v46  ;;  %v128_v60 = vpack.c.bf16 %v93_v56, %v92_v55  ;;  %v258_v62 = vsel %vm208_vm0, %v112_v58, 0  ;;  %v75_v6 = vld [vmem:[%s1346_s0 + $0x138] sm:$0xff]  ;;  %v90_v7 = vld [vmem:[%s1346_s0 + $0x1b0] sm:$0xff]  ;;  %v111_v10 = vpack.c.bf16 %v59_v4, %v58_v2  ;;  %v231_v14 = vsel %vm208_vm0, %v103_v9, 0  ;;  %v40_v17 = vld [vmem:[%s1346_s0 + $0x20] sm:$0xff] }
  0x19   :  { %377 = vmatpush.bf16.xpose.msra.mxu2 %v285_v47  ;;  %v282_v63 = vsel %vm208_vm0, %v120_v59, 0  ;;  %v91_v8 = vld [vmem:[%s1346_s0 + $0x1b8] sm:$0xff]  ;;  %v119_v11 = vpack.c.bf16 %v75_v6, %v74_v5  ;;  %v41_v18 = vld [vmem:[%s1346_s0 + $0x28] sm:$0xff]  ;;  %v56_v19 = vld [vmem:[%s1346_s0 + $0xa0] sm:$0xff] }
  0x1a   :  { %406 = vmatpush.bf16.xpose.msra.mxu3 %v309_v51  ;;  %v306_v3 = vsel %vm208_vm0, %v128_v60, 0  ;;  %v127_v12 = vpack.c.bf16 %v91_v8, %v90_v7  ;;  %v255_v15 = vsel %vm208_vm0, %v111_v10, 0  ;;  %v57_v21 = vld [vmem:[%s1346_s0 + $0xa8] sm:$0xff]  ;;  %v72_v22 = vld [vmem:[%s1346_s0 + $0x120] sm:$0xff]  ;;  %v102_v26 = vpack.c.bf16 %v41_v18, %v40_v17  ;;  %v146_v27 = vld [vmem:[%s1348_s2 + $0x30] sm:$0xff] }
  0x1b   :  { %v279_v16 = vsel %vm208_vm0, %v119_v11, 0  ;;  %v73_v23 = vld [vmem:[%s1346_s0 + $0x128] sm:$0xff]  ;;  %v88_v24 = vld [vmem:[%s1346_s0 + $0x1a0] sm:$0xff]  ;;  %v110_v29 = vpack.c.bf16 %v57_v21, %v56_v19  ;;  %180 = vperm.xlu0 %884, %v146_v27   ;;  %v38_v33 = vld [vmem:[%s1346_s0 + $0x10] sm:$0xff] }
  0x1c   :  { %v303_v20 = vsel %vm208_vm0, %v127_v12, 0  ;;  %v89_v25 = vld [vmem:[%s1346_s0 + $0x1a8] sm:$0xff]  ;;  %v144_v28 = vld [vmem:[%s1348_s2 + $0x20] sm:$0xff]  ;;  %v118_v30 = vpack.c.bf16 %v73_v23, %v72_v22  ;;  %v228_v32 = vsel %vm208_vm0, %v102_v26, 0  ;;  %v39_v36 = vld [vmem:[%s1346_s0 + $0x18] sm:$0xff] }
  0x1d   :  { %v126_v31 = vpack.c.bf16 %v89_v25, %v88_v24  ;;  %170 = vperm.xlu1 %885, %v144_v28   ;;  %v252_v34 = vsel %vm208_vm0, %v110_v29, 0  ;;  %v54_v37 = vld [vmem:[%s1346_s0 + $0x90] sm:$0xff]  ;;  %v55_v38 = vld [vmem:[%s1346_s0 + $0x98] sm:$0xff]  ;;  %v101_v45 = vpack.c.bf16 %v39_v36, %v38_v33  ;;  %v36_v52 = vld [vmem:[%s1346_s0] sm:$0xff] }
  0x1e   :  { %v276_v35 = vsel %vm208_vm0, %v118_v30, 0  ;;  %v70_v40 = vld [vmem:[%s1346_s0 + $0x110] sm:$0xff]  ;;  %v71_v41 = vld [vmem:[%s1346_s0 + $0x118] sm:$0xff]  ;;  %v109_v46 = vpack.c.bf16 %v55_v38, %v54_v37  ;;  %v37_v53 = vld [vmem:[%s1346_s0 + $0x8] sm:$0xff] }
  0x1f   :  { %320 = vmatpush.bf16.xpose.msra.mxu0 %v234_v61  ;;  %v300_v39 = vsel %vm208_vm0, %v126_v31, 0  ;;  %v147_v42 = vld [vmem:[%s1348_s2 + $0x38] sm:$0xff]  ;;  %v86_v43 = vld [vmem:[%s1346_s0 + $0x190] sm:$0xff]  ;;  %v117_v47 = vpack.c.bf16 %v71_v41, %v70_v40  ;;  %v225_v49 = vsel %vm208_vm0, %v101_v45, 0  ;;  %v52_v54 = vld [vmem:[%s1346_s0 + $0x80] sm:$0xff]  ;;  %v100_v61 = vpack.c.bf16 %v37_v53, %v36_v52 }
  0x20   :  { %349 = vmatpush.bf16.xpose.msra.mxu1 %v258_v62  ;;  %v87_v44 = vld [vmem:[%s1346_s0 + $0x198] sm:$0xff]  ;;  %v249_v50 = vsel %vm208_vm0, %v109_v46, 0  ;;  %v53_v56 = vld [vmem:[%s1346_s0 + $0x88] sm:$0xff]  ;;  %v68_v57 = vld [vmem:[%s1346_s0 + $0x100] sm:$0xff] }
  0x21   :  { %378 = vmatpush.bf16.xpose.msra.mxu2 %v282_v63  ;;  %v125_v48 = vpack.c.bf16 %v87_v44, %v86_v43  ;;  %v273_v51 = vsel %vm208_vm0, %v117_v47, 0  ;;  %v69_v58 = vld [vmem:[%s1346_s0 + $0x108] sm:$0xff]  ;;  %v84_v59 = vld [vmem:[%s1346_s0 + $0x180] sm:$0xff]  ;;  %v108_v0 = vpack.c.bf16 %v53_v56, %v52_v54  ;;  %v142_v10 = vld [vmem:[%s1348_s2 + $0x10] sm:$0xff] }
  0x22   :  { %407 = vmatpush.bf16.xpose.msra.mxu3 %v306_v3  ;;  %v85_v60 = vld [vmem:[%s1346_s0 + $0x188] sm:$0xff]  ;;  %v140_v63 = vld [vmem:[%s1348_s2] sm:$0xff]  ;;  %v116_v1 = vpack.c.bf16 %v69_v58, %v68_v57  ;;  %v222_v3 = vsel %vm208_vm0, %v100_v61, 0  ;;  %v488_v11 = vld [vmem:[%s1350_s4 + $0x18] sm:$0xff]  ;;  %160 = vperm.xlu2 %886, %v142_v10  }
  0x23   :  { %185 = vperm.xlu0 %884, %v147_v42   ;;  %v297_v55 = vsel %vm208_vm0, %v125_v48, 0  ;;  %v145_v62 = vld [vmem:[%s1348_s2 + $0x28] sm:$0xff]  ;;  %v124_v2 = vpack.c.bf16 %v85_v60, %v84_v59  ;;  %v246_v4 = vsel %vm208_vm0, %v108_v0, 0  ;;  %v875_v8 = vld [vmem:[%s1347_s1] sm:$0xff]  ;;  %v143_v13 = vld [vmem:[%s1348_s2 + $0x18] sm:$0xff] }
  0x24   :  { %v270_v5 = vsel %vm208_vm0, %v116_v1, 0  ;;  %v141_v7 = vld [vmem:[%s1348_s2 + $0x8] sm:$0xff]  ;;  %v485_v12 = vld [vmem:[%s1350_s4] sm:$0xff]  ;;  %v487_v17 = vld [vmem:[%s1350_s4 + $0x10] sm:$0xff] }
  0x25   :  { %175 = vperm.xlu1 %885, %v145_v62   ;;  %v294_v6 = vsel %vm208_vm0, %v124_v2, 0  ;;  %v876_v9 = vld [vmem:[%s1347_s1 + $0x8] sm:$0xff]  ;;  %v878_v19 = vld [vmem:[%s1347_s1 + $0x18] sm:$0xff] }
  0x26   :  { %v486_v18 = vld [vmem:[%s1350_s4 + $0x8] sm:$0xff] }
  0x27   :  { %321 = vmatpush.bf16.xpose.msra.mxu0 %v231_v14  ;;  %v628_v14 = vld [vmem:[%s1352_s6] sm:$0xff] }
  0x28   :  { %350 = vmatpush.bf16.xpose.msra.mxu1 %v255_v15  ;;  %v629_v15 = vld [vmem:[%s1352_s6 + $0x8] sm:$0xff] }
  0x29   :  { %379 = vmatpush.bf16.xpose.msra.mxu2 %v279_v16  ;;  %v877_v16 = vld [vmem:[%s1347_s1 + $0x10] sm:$0xff] }
  0x2a   :  { %408 = vmatpush.bf16.xpose.msra.mxu3 %v303_v20  ;;  %165 = vperm.xlu2 %886, %v143_v13   ;;  %v717_v20 = vld [vmem:[#allocation2] sm:$0x1] }
  0x2b   :  { %150 = vperm.xlu0 %884, %v140_v63  }
  0x2d   :  { %155 = vperm.xlu1 %885, %v141_v7  }
  0x2f   :  { %322 = vmatpush.bf16.xpose.msra.mxu0 %v228_v32 }
  0x30   :  { %351 = vmatpush.bf16.xpose.msra.mxu1 %v252_v34 }
  0x31   :  { %380 = vmatpush.bf16.xpose.msra.mxu2 %v276_v35 }
  0x32   :  { %409 = vmatpush.bf16.xpose.msra.mxu3 %v300_v39  ;;  %501 = vperm.xlu2 %886, %v487_v17  }
  0x33   :  { %506 = vperm.xlu0 %884, %v488_v11  }
  0x35   :  { %491 = vperm.xlu1 %885, %v485_v12  }
  0x37   :  { %323 = vmatpush.bf16.xpose.msra.mxu0 %v225_v49 }
  0x38   :  { %352 = vmatpush.bf16.xpose.msra.mxu1 %v249_v50 }
  0x39   :  { %381 = vmatpush.bf16.xpose.msra.mxu2 %v273_v51 }
  0x3a   :  { %410 = vmatpush.bf16.xpose.msra.mxu3 %v297_v55  ;;  %496 = vperm.xlu2 %886, %v486_v18  }
  0x3b   :  { %632 = vperm.xlu0 %884, %v628_v14  }
  0x3d   :  { %637 = vperm.xlu1 %885, %v629_v15  }
  0x3f   :  { %324 = vmatpush.bf16.xpose.msra.mxu0 %v222_v3 }
  0x40   :  { %353 = vmatpush.bf16.xpose.msra.mxu1 %v246_v4 }
  0x41   :  { %382 = vmatpush.bf16.xpose.msra.mxu2 %v270_v5 }
  0x42   :  { %411 = vmatpush.bf16.xpose.msra.mxu3 %v294_v6  ;;  %720 = vperm.xlu2 %886, %v717_v20  }
  0x46   :  { %831 = vmatmul.msk.bf16.vlgmr.msra.gmra.mxu0 %vm208_vm0, %v875_v8 }
  0x47   :  { %835 = vmatmul.msk.bf16.vlgmr.msra.gmra.mxu1 %vm208_vm0, %v875_v8 }
  0x48   :  { %839 = vmatmul.msk.bf16.vlgmr.msra.gmra.mxu2 %vm208_vm0, %v875_v8 }
  0x49   :  { %843 = vmatmul.msk.bf16.vlgmr.msra.gmra.mxu3 %vm208_vm0, %v875_v8 }
  0x56   :  { %832 = vmatmul.msk.bf16.gmra.mxu0 %vm208_vm0, %v876_v9 }
  0x57   :  { %836 = vmatmul.msk.bf16.gmra.mxu1 %vm208_vm0, %v876_v9 }
  0x58   :  { %840 = vmatmul.msk.bf16.gmra.mxu2 %vm208_vm0, %v876_v9 }
  0x59   :  { %844 = vmatmul.msk.bf16.gmra.mxu3 %vm208_vm0, %v876_v9 }
  0x66   :  { %833 = vmatmul.msk.bf16.gmra.mxu0 %vm208_vm0, %v877_v16 }
  0x67   :  { %837 = vmatmul.msk.bf16.gmra.mxu1 %vm208_vm0, %v877_v16 }
  0x68   :  { %841 = vmatmul.msk.bf16.gmra.mxu2 %vm208_vm0, %v877_v16 }
  0x69   :  { %845 = vmatmul.msk.bf16.gmra.mxu3 %vm208_vm0, %v877_v16 }
  0x76   :  { %834 = vmatmul.msk.bf16.gmra.mxu0 %vm208_vm0, %v878_v19 }
  0x77   :  { %838 = vmatmul.msk.bf16.gmra.mxu1 %vm208_vm0, %v878_v19 }
  0x78   :  { %842 = vmatmul.msk.bf16.gmra.mxu2 %vm208_vm0, %v878_v19 }
  0x79   :  { %846 = vmatmul.msk.bf16.gmra.mxu3 %vm208_vm0, %v878_v19 }
  0x7c   :  { %v1284_v49 = vpop.permute.xlu2 %160 }
  0x84   :  { %v166_v3 = vpop.permute.xlu2 %165 }
  0x8d   :  { %v181_v39 = vpop.permute.xlu0 %180 }
  0x8f   :  { %v171_v44 = vpop.permute.xlu1 %170 }
  0x95   :  { %v186_v45 = vpop.permute.xlu0 %185 }
  0x97   :  { %v176_v51 = vpop.permute.xlu1 %175 }
  0x9d   :  { %v1286_v52 = vpop.permute.xlu0 %150 }
  0x9f   :  { %v156_v16 = vpop.permute.xlu1 %155 }
  0xc3   :  { %v326_v21 = vpop.f32.mrf.mxu0 }
  0xc4   :  { %v355_v22 = vpop.f32.mrf.mxu1  ;;  %v1289_v55 = vadd.f32 %v326_v21, %v1286_v52 }
  0xc5   :  { %v1292_v2 = vadd.f32 %v355_v22, %v1286_v52 }
  0xc6   :  { %v433_v7 = vmax.f32 %v1289_v55, 0.0 }
  0xcb   :  { %v1262_v23 = vpop.f32.mrf.mxu2  ;;  %v1266_v25 = vpop.f32.mrf.mxu0 }
  0xcc   :  { %v1264_v24 = vpop.f32.mrf.mxu3  ;;  %v1268_v26 = vpop.f32.mrf.mxu1 }
  0xd3   :  { %v1270_v27 = vpop.f32.mrf.mxu2  ;;  %v331_v29 = vpop.f32.mrf.mxu0 }
  0xd4   :  { %v1272_v28 = vpop.f32.mrf.mxu3  ;;  %v360_v30 = vpop.f32.mrf.mxu1  ;;  %v332_v6 = vadd.f32 %v331_v29, %v1284_v49 }
  0xd5   :  { %v361_v11 = vadd.f32 %v360_v30, %v1284_v49 }
  0xd6   :  { %v441_v29 = vmax.f32 %v332_v6, 0.0 }
  0xdb   :  { %v1274_v31 = vpop.f32.mrf.mxu2  ;;  %v333_v33 = vpop.f32.mrf.mxu0 }
  0xdc   :  { %v1276_v32 = vpop.f32.mrf.mxu3  ;;  %v362_v34 = vpop.f32.mrf.mxu1  ;;  %v334_v10 = vadd.f32 %v333_v33, %v166_v3 }
  0xdd   :  { %v363_v15 = vadd.f32 %v362_v34, %v166_v3 }
  0xe3   :  { %v1278_v35 = vpop.f32.mrf.mxu2  ;;  %v336_v37 = vpop.f32.mrf.mxu0 }
  0xe4   :  { %v1280_v36 = vpop.f32.mrf.mxu3  ;;  %v365_v38 = vpop.f32.mrf.mxu1  ;;  %v337_v59 = vadd.f32 %v336_v37, %v171_v44  ;;  %v329_v37 = vadd.f32 %v1266_v25, %v156_v16 }
  0xe5   :  { %v366_v63 = vadd.f32 %v365_v38, %v171_v44  ;;  %v358_v38 = vadd.f32 %v1268_v26, %v156_v16  ;;  %v434_v26 = vmax.f32 %v1292_v2, 0.0  ;;  %v419_v2 = vadd.f32 %v1276_v32, %v1284_v49 }
  0xe6   :  { %v449_v12 = vmax.f32 %v337_v59, 0.0 }
  0xe7   :  { %v450_v17 = vmax.f32 %v366_v63, 0.0 }
  0xeb   :  { %v394_v40 = vpop.f32.mrf.mxu2  ;;  %v338_v42 = vpop.f32.mrf.mxu0 }
  0xec   :  { %v1282_v41 = vpop.f32.mrf.mxu3  ;;  %v367_v43 = vpop.f32.mrf.mxu1  ;;  %v339_v60 = vadd.f32 %v338_v42, %v176_v51 }
  0xed   :  { %v368_v0 = vadd.f32 %v367_v43, %v176_v51  ;;  %v445_v43 = vmax.f32 %v334_v10, 0.0  ;;  %v424_v59 = vadd.f32 %v1282_v41, %v171_v44 }
  0xee   :  { %v453_v13 = vmax.f32 %v339_v60, 0.0 }
  0xef   :  { %v454_v18 = vmax.f32 %v368_v0, 0.0  ;;  %v473_v63 = vpack.c.bf16 %v445_v43, %v441_v29  ;;  %v390_v0 = vadd.f32 %v1274_v31, %v1284_v49  ;;  %v414_v49 = vadd.f32 %v1264_v24, %v1286_v52  ;;  %v880_v24 = vld [vmem:[%s1349_s3 + $0x8] sm:$0xff] }
  0xf1   :  { %v443_v10 = vmax.f32 %v390_v0, 0.0 }
  0xf3   :  { %v396_v46 = vpop.f32.mrf.mxu2  ;;  %v341_v48 = vpop.f32.mrf.mxu0 }
  0xf4   :  { %v425_v47 = vpop.f32.mrf.mxu3  ;;  %v370_v50 = vpop.f32.mrf.mxu1  ;;  %v342_v53 = vadd.f32 %v341_v48, %v181_v39  ;;  %v397_v33 = vadd.f32 %v396_v46, %v176_v51  ;;  %v442_v48 = vmax.f32 %v361_v11, 0.0  ;;  %v392_v46 = vadd.f32 %v1278_v35, %v166_v3 }
  0xf5   :  { %v371_v56 = vadd.f32 %v370_v50, %v181_v39  ;;  %v426_v34 = vadd.f32 %v425_v47, %v176_v51  ;;  %v437_v47 = vmax.f32 %v329_v37, 0.0  ;;  %v452_v35 = vmax.f32 %v424_v59, 0.0 }
  0xf6   :  { %v457_v4 = vmax.f32 %v342_v53, 0.0  ;;  %v477_v53 = vpack.c.bf16 %v453_v13, %v449_v12  ;;  %v444_v11 = vmax.f32 %v419_v2, 0.0  ;;  %v436_v13 = vmax.f32 %v414_v49, 0.0 }
  0xf7   :  { %v458_v8 = vmax.f32 %v371_v56, 0.0  ;;  %v446_v56 = vmax.f32 %v363_v15, 0.0  ;;  %v456_v51 = vmax.f32 %v426_v34, 0.0  ;;  %v469_v31 = vpack.c.bf16 %v437_v47, %v433_v7 }
  0xfb   :  { %v399_v54 = vpop.f32.mrf.mxu2  ;;  %v343_v58 = vpop.f32.mrf.mxu0 }
  0xfc   :  { %v428_v57 = vpop.f32.mrf.mxu3  ;;  %v344_v61 = vadd.f32 %v343_v58, %v186_v45  ;;  %v372_v62 = vpop.f32.mrf.mxu1  ;;  %v400_v19 = vadd.f32 %v399_v54, %v181_v39  ;;  %v395_v54 = vadd.f32 %v394_v40, %v171_v44  ;;  %v474_v44 = vpack.c.bf16 %v446_v56, %v442_v48 }
  0xfd   :  { %v373_v1 = vadd.f32 %v372_v62, %v186_v45  ;;  %v429_v21 = vadd.f32 %v428_v57, %v181_v39  ;;  %v478_v57 = vpack.c.bf16 %v454_v18, %v450_v17  ;;  %v492_v56 = vpop.permute.xlu1 %491 }
  0xfe   :  { %v461_v5 = vmax.f32 %v344_v61, 0.0  ;;  %v459_v58 = vmax.f32 %v400_v19, 0.0  ;;  %v455_v61 = vmax.f32 %v397_v33, 0.0  ;;  %v451_v41 = vmax.f32 %v395_v54, 0.0  ;;  %v507_v33 = vpop.permute.xlu0 %506 }
  0xff   :  { %v462_v9 = vmax.f32 %v373_v1, 0.0  ;;  %v460_v60 = vmax.f32 %v429_v21, 0.0  ;;  %v438_v1 = vmax.f32 %v358_v38, 0.0 }
 0x100   :  { %v481_v14 = vpack.c.bf16 %v461_v5, %v457_v4  ;;  %v387_v4 = vadd.f32 %v1270_v27, %v156_v16  ;;  %v447_v5 = vmax.f32 %v392_v46, 0.0  ;;  %v879_v27 = vld [vmem:[%s1349_s3] sm:$0xff] }
 0x101   :  { %v482_v20 = vpack.c.bf16 %v462_v9, %v458_v8  ;;  %v480_v8 = vpack.c.bf16 %v456_v51, %v452_v35  ;;  %v385_v9 = vadd.f32 %v1262_v23, %v1286_v52  ;;  %v470_v32 = vpack.c.bf16 %v438_v1, %v434_v26 }
 0x102   :  { %530 = vmatpush.bf16.msrb.mxu0 %v481_v14  ;;  %v475_v55 = vpack.c.bf16 %v447_v5, %v443_v10 }
 0x103   :  { %v401_v22 = vpop.f32.mrf.mxu2  ;;  %549 = vmatpush.bf16.msrb.mxu1 %v482_v20  ;;  %v435_v23 = vmax.f32 %v385_v9, 0.0  ;;  %v502_v20 = vpop.permute.xlu2 %501 }
 0x104   :  { %v402_v42 = vadd.f32 %v401_v22, %v186_v45  ;;  %v430_v30 = vpop.f32.mrf.mxu3 }
 0x105   :  { %v431_v50 = vadd.f32 %v430_v30, %v186_v45  ;;  %v421_v45 = vadd.f32 %v1280_v36, %v166_v3  ;;  %v479_v36 = vpack.c.bf16 %v455_v61, %v451_v41  ;;  %v416_v3 = vadd.f32 %v1272_v28, %v156_v16 }
 0x106   :  { %v463_v39 = vmax.f32 %v402_v42, 0.0  ;;  %531 = vmatpush.bf16.msrb.mxu0 %v477_v53  ;;  %v439_v28 = vmax.f32 %v387_v4, 0.0 }
 0x107   :  { %v464_v25 = vmax.f32 %v431_v50, 0.0  ;;  %550 = vmatpush.bf16.msrb.mxu1 %v478_v57  ;;  %v448_v6 = vmax.f32 %v421_v45, 0.0  ;;  %v440_v7 = vmax.f32 %v416_v3, 0.0 }
 0x108   :  { %v483_v62 = vpack.c.bf16 %v463_v39, %v459_v58  ;;  %v471_v14 = vpack.c.bf16 %v439_v28, %v435_v23 }
 0x109   :  { %v484_v40 = vpack.c.bf16 %v464_v25, %v460_v60  ;;  %v476_v12 = vpack.c.bf16 %v448_v6, %v444_v11  ;;  %v472_v15 = vpack.c.bf16 %v440_v7, %v436_v13 }
 0x10a   :  { %568 = vmatpush.bf16.msrb.mxu2 %v483_v62  ;;  %532 = vmatpush.bf16.msrb.mxu0 %v473_v63 }
 0x10b   :  { %587 = vmatpush.bf16.msrb.mxu3 %v484_v40  ;;  %551 = vmatpush.bf16.msrb.mxu1 %v474_v44  ;;  %v497_v30 = vpop.permute.xlu2 %496  ;;  %v881_v44 = vld [vmem:[%s1351_s5] sm:$0xff] }
 0x10e   :  { %569 = vmatpush.bf16.msrb.mxu2 %v479_v36  ;;  %533 = vmatpush.bf16.msrb.mxu0 %v469_v31 }
 0x10f   :  { %588 = vmatpush.bf16.msrb.mxu3 %v480_v8  ;;  %552 = vmatpush.bf16.msrb.mxu1 %v470_v32 }
 0x111   :  { %855 = vmatmul.msk.bf16.vlgmr.msrb.gmra.mxu0 %vm519_vm1, %v879_v27 }
 0x112   :  { %570 = vmatpush.bf16.msrb.mxu2 %v475_v55  ;;  %857 = vmatmul.msk.bf16.vlgmr.msrb.gmra.mxu1 %vm519_vm1, %v879_v27 }
 0x113   :  { %589 = vmatpush.bf16.msrb.mxu3 %v476_v12 }
 0x116   :  { %571 = vmatpush.bf16.msrb.mxu2 %v471_v14 }
 0x117   :  { %590 = vmatpush.bf16.msrb.mxu3 %v472_v15 }
 0x119   :  { %859 = vmatmul.msk.bf16.vlgmr.msrb.gmra.mxu2 %vm519_vm1, %v879_v27 }
 0x11a   :  { %861 = vmatmul.msk.bf16.vlgmr.msrb.gmra.mxu3 %vm519_vm1, %v879_v27 }
 0x121   :  { %856 = vmatmul.msk.bf16.gmra.mxu0 %vm519_vm1, %v880_v24 }
 0x122   :  { %858 = vmatmul.msk.bf16.gmra.mxu1 %vm519_vm1, %v880_v24 }
 0x129   :  { %860 = vmatmul.msk.bf16.gmra.mxu2 %vm519_vm1, %v880_v24 }
 0x12a   :  { %862 = vmatmul.msk.bf16.gmra.mxu3 %vm519_vm1, %v880_v24  ;;  %v633_v24 = vpop.permute.xlu0 %632 }
 0x18e   :  { %v535_v52 = vpop.f32.mrf.mxu0 }
 0x18f   :  { %v554_v16 = vpop.f32.mrf.mxu1  ;;  %v536_v39 = vadd.f32 %v535_v52, %v492_v56 }
 0x190   :  { %v555_v60 = vadd.f32 %v554_v16, %v492_v56  ;;  %v638_v16 = vpop.permute.xlu1 %637 }
 0x191   :  { %v602_v40 = vmax.f32 %v536_v39, 0.0 }
 0x192   :  { %v603_v63 = vmax.f32 %v555_v60, 0.0 }
 0x196   :  { %v537_v17 = vpop.f32.mrf.mxu0 }
 0x197   :  { %v556_v18 = vpop.f32.mrf.mxu1  ;;  %v538_v34 = vadd.f32 %v537_v17, %v497_v30 }
 0x198   :  { %v557_v54 = vadd.f32 %v556_v18, %v497_v30 }
 0x199   :  { %v606_v46 = vmax.f32 %v538_v34, 0.0 }
 0x19a   :  { %v607_v47 = vmax.f32 %v557_v54, 0.0 }
 0x19b   :  { %v620_v0 = vpack.c.bf16 %v606_v46, %v602_v40 }
 0x19c   :  { %v573_v19 = vpop.f32.mrf.mxu2  ;;  %v621_v41 = vpack.c.bf16 %v607_v47, %v603_v63 }
 0x19d   :  { %v592_v21 = vpop.f32.mrf.mxu3  ;;  %v574_v8 = vadd.f32 %v573_v19, %v492_v56 }
 0x19e   :  { %v540_v22 = vpop.f32.mrf.mxu0  ;;  %v593_v10 = vadd.f32 %v592_v21, %v492_v56 }
 0x19f   :  { %v559_v29 = vpop.f32.mrf.mxu1  ;;  %v541_v42 = vadd.f32 %v540_v22, %v502_v20  ;;  %v604_v7 = vmax.f32 %v574_v8, 0.0 }
 0x1a0   :  { %v560_v43 = vadd.f32 %v559_v29, %v502_v20  ;;  %v605_v12 = vmax.f32 %v593_v10, 0.0 }
 0x1a1   :  { %v610_v57 = vmax.f32 %v541_v42, 0.0 }
 0x1a2   :  { %v611_v25 = vmax.f32 %v560_v43, 0.0 }
 0x1a4   :  { %v575_v37 = vpop.f32.mrf.mxu2 }
 0x1a5   :  { %v594_v38 = vpop.f32.mrf.mxu3  ;;  %v576_v4 = vadd.f32 %v575_v37, %v497_v30 }
 0x1a6   :  { %v542_v48 = vpop.f32.mrf.mxu0  ;;  %v595_v3 = vadd.f32 %v594_v38, %v497_v30  ;;  %v712_v30 = vld [vmem:[%s1353_s7] sm:$0x1]  ;;  %s914_s7 = smov [#allocation3]  }
 0x1a7   :  { %v543_v50 = vadd.f32 %v542_v48, %v507_v33  ;;  %v561_v53 = vpop.f32.mrf.mxu1  ;;  %v608_v49 = vmax.f32 %v576_v4, 0.0  ;;  %s804_s20 = sshll.u32 %s914_s7, 4  ;;  %s805_s20 = int_to_ptr.vmem [resolvable:$true] %s804_s20 }
 0x1a8   :  { %v562_v58 = vadd.f32 %v561_v53, %v507_v33  ;;  %v609_v28 = vmax.f32 %v595_v3, 0.0 }
 0x1a9   :  { %v614_v59 = vmax.f32 %v543_v50, 0.0  ;;  %v622_v23 = vpack.c.bf16 %v608_v49, %v604_v7 }
 0x1aa   :  { %v615_v26 = vmax.f32 %v562_v58, 0.0  ;;  %v623_v13 = vpack.c.bf16 %v609_v28, %v605_v12 }
 0x1ab   :  { %v624_v61 = vpack.c.bf16 %v614_v59, %v610_v57 }
 0x1ac   :  { %v578_v62 = vpop.f32.mrf.mxu2  ;;  %v625_v45 = vpack.c.bf16 %v615_v26, %v611_v25 }
 0x1ad   :  { %v597_v51 = vpop.f32.mrf.mxu3  ;;  %654 = vmatpush.bf16.msra.mxu0 %v624_v61  ;;  %v579_v1 = vadd.f32 %v578_v62, %v502_v20 }
 0x1ae   :  { %668 = vmatpush.bf16.msra.mxu1 %v625_v45  ;;  %v598_v2 = vadd.f32 %v597_v51, %v502_v20  ;;  %v721_v45 = vpop.permute.xlu2 %720 }
 0x1af   :  { %v612_v31 = vmax.f32 %v579_v1, 0.0  ;;  %v723_v51 = vperm.slane %v721_v45, 0 }
 0x1b0   :  { %v613_v32 = vmax.f32 %v598_v2, 0.0 }
 0x1b1   :  { %655 = vmatpush.bf16.msra.mxu0 %v620_v0 }
 0x1b2   :  { %669 = vmatpush.bf16.msra.mxu1 %v621_v41 }
 0x1b4   :  { %v580_v35 = vpop.f32.mrf.mxu2  ;;  %867 = vmatmul.msk.bf16.vlgmr.msra.gmra.mxu0 %vm208_vm0, %v881_v44 }
 0x1b5   :  { %v581_v5 = vadd.f32 %v580_v35, %v507_v33  ;;  %v599_v36 = vpop.f32.mrf.mxu3  ;;  %868 = vmatmul.msk.bf16.vlgmr.msra.gmra.mxu1 %vm208_vm0, %v881_v44 }
 0x1b6   :  { %v600_v6 = vadd.f32 %v599_v36, %v507_v33 }
 0x1b7   :  { %v616_v9 = vmax.f32 %v581_v5, 0.0 }
 0x1b8   :  { %v617_v27 = vmax.f32 %v600_v6, 0.0 }
 0x1b9   :  { %v626_v11 = vpack.c.bf16 %v616_v9, %v612_v31 }
 0x1ba   :  { %v627_v55 = vpack.c.bf16 %v617_v27, %v613_v32 }
 0x1bb   :  { %682 = vmatpush.bf16.msra.mxu2 %v626_v11 }
 0x1bc   :  { %696 = vmatpush.bf16.msra.mxu3 %v627_v55 }
 0x1bf   :  { %683 = vmatpush.bf16.msra.mxu2 %v622_v23 }
 0x1c0   :  { %697 = vmatpush.bf16.msra.mxu3 %v623_v13 }
 0x1c2   :  { %869 = vmatmul.msk.bf16.vlgmr.msra.gmra.mxu2 %vm208_vm0, %v881_v44 }
 0x1c3   :  { %870 = vmatmul.msk.bf16.vlgmr.msra.gmra.mxu3 %vm208_vm0, %v881_v44  ;;  %v794_v44 = vlaneseq }
 0x1c5   :  { %vm796_vm6 = vcmp.lt.s32.totalorder %v794_v44, 512 }
 0x231   :  { %v657_v14 = vpop.f32.mrf.mxu0 }
 0x232   :  { %v671_v15 = vpop.f32.mrf.mxu1  ;;  %v658_v52 = vadd.f32 %v657_v14, %v633_v24 }
 0x233   :  { %v672_v17 = vadd.f32 %v671_v15, %v633_v24 }
 0x234   :  { %v704_v22 = vmax.f32 %v658_v52, 0.0 }
 0x235   :  { %v705_v37 = vmax.f32 %v672_v17, 0.0 }
 0x239   :  { %v659_v18 = vpop.f32.mrf.mxu0 }
 0x23a   :  { %v660_v19 = vadd.f32 %v659_v18, %v638_v16  ;;  %v673_v20 = vpop.f32.mrf.mxu1 }
 0x23b   :  { %v674_v21 = vadd.f32 %v673_v20, %v638_v16 }
 0x23c   :  { %v708_v29 = vmax.f32 %v660_v19, 0.0 }
 0x23d   :  { %v709_v38 = vmax.f32 %v674_v21, 0.0 }
 0x23e   :  { %v713_v33 = vpack.c.bf16 %v708_v29, %v704_v22 }
 0x23f   :  { %v714_v42 = vpack.c.bf16 %v709_v38, %v705_v37 }
 0x240   :  { %735 = vmatpush.bf16.msrb.mxu0 %v713_v33 }
 0x241   :  { %748 = vmatpush.bf16.msrb.mxu1 %v714_v42 }
 0x243   :  { %871 = vmatmul.msk.bf16.vlgmr.msrb.gmra.mxu0 %vm724_vm2, %v712_v30 }
 0x244   :  { %872 = vmatmul.msk.bf16.vlgmr.msrb.gmra.mxu1 %vm724_vm2, %v712_v30 }
 0x245   :  { %v685_v43 = vpop.f32.mrf.mxu2 }
 0x246   :  { %v699_v48 = vpop.f32.mrf.mxu3  ;;  %v686_v34 = vadd.f32 %v685_v43, %v633_v24 }
 0x247   :  { %v700_v50 = vadd.f32 %v699_v48, %v633_v24 }
 0x248   :  { %v706_v39 = vmax.f32 %v686_v34, 0.0 }
 0x249   :  { %v707_v59 = vmax.f32 %v700_v50, 0.0 }
 0x24d   :  { %v687_v53 = vpop.f32.mrf.mxu2 }
 0x24e   :  { %v688_v56 = vadd.f32 %v687_v53, %v638_v16  ;;  %v701_v54 = vpop.f32.mrf.mxu3 }
 0x24f   :  { %v702_v58 = vadd.f32 %v701_v54, %v638_v16 }
 0x250   :  { %v710_v57 = vmax.f32 %v688_v56, 0.0 }
 0x251   :  { %v711_v60 = vmax.f32 %v702_v58, 0.0 }
 0x252   :  { %v715_v25 = vpack.c.bf16 %v710_v57, %v706_v39 }
 0x253   :  { %v716_v26 = vpack.c.bf16 %v711_v60, %v707_v59 }
 0x254   :  { %761 = vmatpush.bf16.msrb.mxu2 %v715_v25 }
 0x255   :  { %774 = vmatpush.bf16.msrb.mxu3 %v716_v26 }
 0x257   :  { %873 = vmatmul.msk.bf16.vlgmr.msrb.gmra.mxu2 %vm724_vm2, %v712_v30 }
 0x258   :  { %874 = vmatmul.msk.bf16.vlgmr.msrb.gmra.mxu3 %vm724_vm2, %v712_v30 }
 0x2c0   :  { %v737_v46 = vpop.f32.mrf.mxu0 }
 0x2c1   :  { %v750_v61 = vpop.f32.mrf.mxu1  ;;  %v738_v4 = vadd.f32 %v737_v46, %v723_v51 }
 0x2c2   :  { %v751_v40 = vadd.f32 %v750_v61, %v723_v51 }
 0x2c4   :  { %v784_v1 = vrot.slane %v751_v40, 7 }
 0x2c6   :  { %v788_v36 = vsel %vm787_vm3, %v738_v4, %v784_v1 }
 0x2c8   :  { %v739_v62 = vpop.f32.mrf.mxu0 }
 0x2c9   :  { %v752_v47 = vpop.f32.mrf.mxu1 }
 0x2da   :  { %v763_v63 = vpop.f32.mrf.mxu2 }
 0x2db   :  { %v764_v0 = vadd.f32 %v763_v63, %v723_v51  ;;  %v776_v41 = vpop.f32.mrf.mxu3 }
 0x2dc   :  { %v777_v2 = vadd.f32 %v776_v41, %v723_v51 }
 0x2dd   :  { %v785_v35 = vrot.slane %v764_v0, 6 }
 0x2de   :  { %v786_v5 = vrot.slane %v777_v2, 5 }
 0x2e0   :  { %v790_v3 = vsel %vm789_vm4, %v785_v35, %v786_v5 }
 0x2e1   :  { %v792_v6 = vsel %vm791_vm5, %v788_v36, %v790_v3 }
 0x2e2   :  { %v765_v8 = vpop.f32.mrf.mxu2  ;;  %798 = vst.msk [vmem:[#allocation3] sm:$0xf] %vm796_vm6, %v792_v6 }
 0x2e3   :  { %v778_v31 = vpop.f32.mrf.mxu3  ;;  %809 = dma.vmem_to_hbm [thread:$0]  %s805_s20, 64, %s807_s23, [#allocation4]  }
 0x2e4   :  { %911 = dma.done.wait [#allocation4], 64  }
 0x2e5   :  { %912 = vsyncadd [#allocation4], 4294967232 }
 0x2e6   :  { %814 = vsyncpa [#allocation4], 1 }

</bundles_post_ra>
